<compile_context>
chip_gen: v5e
topology: v5e:2x2
jax: 0.10.0
libtpu: 0.0.40
codegen_flags: <defaults>
</compile_context>

<pallas_src>
import functools
import math

import jax
import jax.numpy as jnp
from jax import lax
from jax.experimental import pallas as pl
from jax.experimental.pallas import tpu as pltpu

_TEN_OVER_LN10 = 10.0 / math.log(10.0)
# ~4 MiB f32 per input block per grid step: 2 inputs x 2 pipeline buffers
# = ~16 MiB, safely under the scoped-VMEM limit on v5e/v6e/v7x. (v5e/v6e could
# go larger, but one safe size keeps v7x's 64 MiB physical VMEM comfortable.)
_TARGET_BLOCK_ELEMS = 1024 * 1024


def _sse_kernel(t_ref, o_ref, sse_ref, *, total_d, tile_d, nd_inner, needs_mask):
    """Accumulates per-sample SSE of the [0,1]-clipped inputs into sse_ref.

    sse_ref is a (1, nb, 1) output block whose index is constant along the
    innermost (reduction) grid axis, so it stays resident in VMEM and acts as
    the accumulator (no scratch). data_range cancels exactly:
    10*log10(dr^2 / (dr^2*sse/D)) == 10*log10(D/sse).
    """
    p = pl.program_id(1)
    d = pl.program_id(2)

    @pl.when(d == 0)
    def _():
        sse_ref[...] = jnp.zeros_like(sse_ref)

    t = jnp.clip(t_ref[...].astype(jnp.float32), 0.0, 1.0)
    o = jnp.clip(o_ref[...].astype(jnp.float32), 0.0, 1.0)
    diff = t - o

    if needs_mask:
        # Ragged last D tile (and the fully-masked duplicate tile produced by
        # the clamped index_map when the D-tile count is odd): zero any lane
        # whose global column index is >= D. Statically omitted otherwise.
        col0 = (p * nd_inner + d) * tile_d
        col = lax.broadcasted_iota(jnp.int32, diff.shape, 1) + col0
        diff = jnp.where(col < total_d, diff, 0.0)

    # Lane-axis reduction: the bulk lowers to elementwise vreg adds (VALU); the
    # single cross-lane reduce per step rides the otherwise-idle XLU slot and
    # hides under the DMA time of this HBM-bound kernel.
    partial = jnp.sum(diff * diff, axis=1, keepdims=True)  # (nb, 1)
    sse_ref[...] += partial.reshape(sse_ref.shape)


def _pick_batch_block(n):
    """Largest multiple-of-8 divisor of N that still leaves >= 2 batch blocks
    (so the 'parallel' batch axis can shard across v7x's two TensorCores);
    otherwise the whole batch is one block (full-dim blocks are always legal)."""
    if n % 8 == 0:
        for cand in (128, 64, 32, 16, 8):
            if n % cand == 0 and n // cand >= 2:
                return cand
    return n


def _pick_d_tile(d, nb):
    """Lane tile size: either the whole D axis (single full-extent block, legal
    for any D) or the largest multiple of 128 that keeps the per-input block
    near _TARGET_BLOCK_ELEMS f32 elements (~4 MiB). No divisibility
    requirement on D: the ragged last tile is masked in the kernel."""
    cap = max(128, (_TARGET_BLOCK_ELEMS // (nb * 128)) * 128)
    return d if d <= cap else cap


def loss_psnr(target, output, data_range=255):
    """Pallas implementation of Loss_PSNR.forward(target, output, data_range)."""
    assert target.shape == output.shape and target.ndim == 4
    # data_range cancels algebraically out of the PSNR formula (both tensors
    # are clipped to [0,1] BEFORE scaling in the PyTorch module).
    del data_range
    N, C, H, W = target.shape
    D = C * H * W

    # Flatten NCHW -> (N, D) (row-major, same order as torch .resize_).
    # No HBM padding copies: ragged tiles are masked inside the kernel.
    t2 = target.reshape(N, D)
    o2 = output.reshape(N, D)

    nb = _pick_batch_block(N)
    n_bblocks = N // nb
    tile_d = _pick_d_tile(D, nb)
    nd = pl.cdiv(D, tile_d)

    # v7x megacore: if the batch axis has a single block, split the D reduction
    # into 2 parallel chunks producing partial SSE columns (combined below).
    d_par = 2 if (n_bblocks == 1 and nd >= 2) else 1
    nd_inner = pl.cdiv(nd, d_par)

    # Masking is needed iff the last D tile is ragged or the parallel split
    # produced a (fully masked) duplicate tile.
    needs_mask = (D % tile_d != 0) or (d_par * nd_inner != nd)

    if d_par * nd_inner == nd:
        def d_block(p, d):
            return p * nd_inner + d
    else:
        # Clamp the one out-of-range duplicate block index back in bounds; its
        # contribution is zeroed by the in-kernel mask.
        def d_block(p, d):
            return jnp.minimum(p * nd_inner + d, nd - 1)

    kernel = functools.partial(
        _sse_kernel, total_d=D, tile_d=tile_d, nd_inner=nd_inner,
        needs_mask=needs_mask)

    partial_sse = pl.pallas_call(
        kernel,
        out_shape=jax.ShapeDtypeStruct((d_par, N, 1), jnp.float32),
        grid_spec=pltpu.PrefetchScalarGridSpec(
            num_scalar_prefetch=0,
            grid=(n_bblocks, d_par, nd_inner),
            in_specs=[
                pl.BlockSpec((nb, tile_d), lambda b, p, d: (b, d_block(p, d))),
                pl.BlockSpec((nb, tile_d), lambda b, p, d: (b, d_block(p, d))),
            ],
            out_specs=pl.BlockSpec((1, nb, 1), lambda b, p, d: (p, b, 0)),
        ),
        compiler_params=pltpu.CompilerParams(
            # Batch axis and D-chunk axis are independent (megacore-shardable
            # on v7x); the innermost D axis is the sequential reduction whose
            # output block stays resident (accumulator).
            dimension_semantics=("parallel", "parallel", "arbitrary"),
            # 2 inputs x 2 pipeline buffers x ~4 MiB blocks = ~16 MiB.
            vmem_limit_bytes=32 * 1024 * 1024,
        ),
    )(t2, o2)

    # Tiny glue: combine partial SSE columns, per-sample PSNR, batch mean.
    sse = jnp.sum(partial_sse[..., 0], axis=0)  # (N,)
    # TODO(synk): sse == 0 -> +inf PSNR, matching the PyTorch reference.
    psnr = _TEN_OVER_LN10 * jnp.log(jnp.float32(D) / sse)
    return jnp.mean(psnr)


def loss_psnr_ref(target, output, data_range=255):
    """Pure-JAX reference mirroring the PyTorch module."""
    N, C, H, W = target.shape
    D = C * H * W
    t = (jnp.clip(target, 0.0, 1.0) * data_range).reshape(N, D)
    o = (jnp.clip(output, 0.0, 1.0) * data_range).reshape(N, D)
    err = jnp.sum((t - o) ** 2, axis=1, keepdims=True) / D
    psnr = 10.0 * jnp.log(data_range ** 2 / err) / jnp.log(10.0)
    return jnp.mean(psnr)


if __name__ == "__main__":
    key = jax.random.PRNGKey(0)
    k1, k2 = jax.random.split(key)
    N, C, H, W = 2, 4, 16, 16  # small NCHW shapes consistent with the module
    target = jax.random.uniform(k1, (N, C, H, W), dtype=jnp.float32)
    # Perturb target a bit so MSE is non-zero (avoids log(inf)).
    output = jnp.clip(
        target + 0.05 * jax.random.normal(k2, (N, C, H, W), dtype=jnp.float32),
        0.0,
        1.0,
    )

    result = jax.block_until_ready(loss_psnr(target, output))
    ref = jax.block_until_ready(loss_psnr_ref(target, output))

    assert jnp.allclose(result, ref, rtol=1e-5, atol=1e-4), (result, ref)
    print("KERNEL_OK")
</pallas_src>

<mosaic_0001>
module attributes {stable_mosaic.version = 11 : i64} {
  func.func @_sse_kernel(%arg0: i32, %arg1: i32, %arg2: i32, %arg3: memref<2x1024xf32, #tpu.memory_space<vmem>>, %arg4: memref<2x1024xf32, #tpu.memory_space<vmem>>, %arg5: memref<1x2x1xf32, #tpu.memory_space<vmem>>) attributes {dimension_semantics = [#tpu.dimension_semantics<parallel>, #tpu.dimension_semantics<parallel>, #tpu.dimension_semantics<arbitrary>], iteration_bounds = array<i64: 1, 1, 1>, scalar_prefetch = 0 : i64, scratch_operands = 0 : i64, tpu.core_type = #tpu.core_type<tc>, window_params = [{transform_indices = @transform_0, window_bounds = array<i64: 2, 1024>}, {transform_indices = @transform_1, window_bounds = array<i64: 2, 1024>}, {transform_indices = @transform_2, window_bounds = array<i64: 1, 2, 1>}]} {
    %c0_i32 = arith.constant 0 : i32
    %0 = arith.cmpi eq, %arg2, %c0_i32 : i32
    %1 = arith.extui %0 : i1 to i32
    %c0_i32_0 = arith.constant 0 : i32
    %2 = arith.cmpi ne, %1, %c0_i32_0 : i32
    scf.if %2 {
      %cst_14 = arith.constant 0.000000e+00 : f32
      %21 = vector.broadcast %cst_14 : f32 to vector<1x2x1xf32>
      %c0_15 = arith.constant 0 : index
      %c0_16 = arith.constant 0 : index
      %c0_17 = arith.constant 0 : index
      %22 = vector.load %arg5[%c0_15, %c0_16, %c0_17] : memref<1x2x1xf32, #tpu.memory_space<vmem>>, vector<1x2x1xf32>
      tpu.vector_store %arg5[%c0_15, %c0_16, %c0_17], %21 {strides = array<i32>} : memref<1x2x1xf32, #tpu.memory_space<vmem>>, vector<1x2x1xf32>,
    } else {
    }
    %c0 = arith.constant 0 : index
    %c0_1 = arith.constant 0 : index
    %3 = vector.load %arg3[%c0, %c0_1] : memref<2x1024xf32, #tpu.memory_space<vmem>>, vector<2x1024xf32>
    %cst = arith.constant 0.000000e+00 : f32
    %cst_2 = arith.constant 1.000000e+00 : f32
    %4 = vector.broadcast %cst : f32 to vector<2x1024xf32>
    %5 = arith.maximumf %4, %3 : vector<2x1024xf32>
    %6 = vector.broadcast %cst_2 : f32 to vector<2x1024xf32>
    %7 = arith.minimumf %6, %5 : vector<2x1024xf32>
    %c0_3 = arith.constant 0 : index
    %c0_4 = arith.constant 0 : index
    %8 = vector.load %arg4[%c0_3, %c0_4] : memref<2x1024xf32, #tpu.memory_space<vmem>>, vector<2x1024xf32>
    %cst_5 = arith.constant 0.000000e+00 : f32
    %cst_6 = arith.constant 1.000000e+00 : f32
    %9 = vector.broadcast %cst_5 : f32 to vector<2x1024xf32>
    %10 = arith.maximumf %9, %8 : vector<2x1024xf32>
    %11 = vector.broadcast %cst_6 : f32 to vector<2x1024xf32>
    %12 = arith.minimumf %11, %10 : vector<2x1024xf32>
    %13 = arith.subf %7, %12 : vector<2x1024xf32>
    %14 = arith.mulf %13, %13 : vector<2x1024xf32>
    %cst_7 = arith.constant dense<0.000000e+00> : vector<2xf32>
    %15 = vector.multi_reduction <add>, %14, %cst_7 [1] : vector<2x1024xf32> to vector<2xf32>
    %16 = vector.shape_cast %15 : vector<2xf32> to vector<2x1xf32>
    %c0_8 = arith.constant 0 : index
    %c0_9 = arith.constant 0 : index
    %c0_10 = arith.constant 0 : index
    %17 = vector.load %arg5[%c0_8, %c0_9, %c0_10] : memref<1x2x1xf32, #tpu.memory_space<vmem>>, vector<1x2x1xf32>
    %18 = vector.shape_cast %16 : vector<2x1xf32> to vector<1x2x1xf32>
    %19 = arith.addf %17, %18 : vector<1x2x1xf32>
    %c0_11 = arith.constant 0 : index
    %c0_12 = arith.constant 0 : index
    %c0_13 = arith.constant 0 : index
    %20 = vector.load %arg5[%c0_11, %c0_12, %c0_13] : memref<1x2x1xf32, #tpu.memory_space<vmem>>, vector<1x2x1xf32>
    tpu.vector_store %arg5[%c0_11, %c0_12, %c0_13], %19 {strides = array<i32>} : memref<1x2x1xf32, #tpu.memory_space<vmem>>, vector<1x2x1xf32>,
    return
  }
  func.func @transform_0(%arg0: i32, %arg1: i32, %arg2: i32) -> (i32, i32) {
    %c1_i32 = arith.constant 1 : i32
    %0 = arith.muli %arg1, %c1_i32 : i32
    %1 = arith.addi %0, %arg2 : i32
    %c0_i32 = arith.constant 0 : i32
    return %arg0, %1 : i32, i32
  }
  func.func @transform_1(%arg0: i32, %arg1: i32, %arg2: i32) -> (i32, i32) {
    %c1_i32 = arith.constant 1 : i32
    %0 = arith.muli %arg1, %c1_i32 : i32
    %1 = arith.addi %0, %arg2 : i32
    %c0_i32 = arith.constant 0 : i32
    return %arg0, %1 : i32, i32
  }
  func.func @transform_2(%arg0: i32, %arg1: i32, %arg2: i32) -> (i32, i32, i32) {
    %c0_i32 = arith.constant 0 : i32
    %c0_i32_0 = arith.constant 0 : i32
    return %arg1, %arg0, %c0_i32 : i32, i32, i32
  }
}

</mosaic_0001>

<bundles_post_ra>
// kernel: tpu_custom_call.1
= control target key start
LH: loop header
LB: loop body
LE: loop exit
PB: predicated region body
PF: predicated region fallthrough
CT: control target
= control target key end

     0   :  { %7 = vsyncpa [#allocation3], 0  ;;  %s220_s0 = inlined_call_operand.hbm [shape: f32[2,1024], index: 0, kind: input, shape index: {}]   ;;  %s221_s1 = inlined_call_operand.hbm [shape: f32[2,1024], index: 1, kind: input, shape index: {}]   ;;  %s222_s2 = inlined_call_operand.vmem [shape: f32[1,2,1], index: 2, kind: output, shape index: {}]  }
   0x1   :  { %s18_s11 = sshll.u32 %s220_s0, 4  ;;  %s19_s11 = int_to_ptr.hbm [resolvable:$true] %s18_s11 }
   0x2   :  { %8 = vsyncpa [#allocation5], 0  ;;  %s177_s12 = smov [#allocation2]   ;;  %s33_s16 = sshll.u32 %s221_s1, 4  ;;  %s34_s16 = int_to_ptr.hbm [resolvable:$true] %s33_s16 }
   0x3   :  { %s20_s13 = sshll.u32 %s177_s12, 4  ;;  %s178_s17 = smov [#allocation4]   ;;  %s21_s13 = int_to_ptr.vmem [resolvable:$true] %s20_s13 }
   0x4   :  { %23 = dma.hbm_to_vmem [thread:$0]  %s19_s11, 256, %s21_s13, [#allocation3]  }
   0x5   :  { %s35_s18 = sshll.u32 %s178_s17, 4  ;;  %s36_s18 = int_to_ptr.vmem [resolvable:$true] %s35_s18 }
   0x6   :  { %38 = dma.hbm_to_vmem [thread:$0]  %s34_s16, 256, %s36_s18, [#allocation5]  }
   0x7   :  { %173 = dma.done.wait [#allocation3], 256  }
   0x8   :  { %174 = vsyncadd [#allocation3], 4294967040 }
   0x9   :  { %175 = dma.done.wait [#allocation5], 256  }
   0xa   :  { %176 = vsyncadd [#allocation5], 4294967040  ;;  %v57_v0 = vld [vmem:[#allocation2] sm:$0xff]  ;;  %v58_v1 = vld [vmem:[#allocation2 + $0x8] sm:$0xff]  ;;  %vm55_vm0 = vcmask 1024   ;;  %v179_v13 = vmov 0.0  }
   0xb   :  { %v63_v2 = vld [vmem:[#allocation4] sm:$0xff]  ;;  %v59_v3 = vmax.f32 %v57_v0, 0.0  ;;  %v60_v4 = vmax.f32 %v58_v1, 0.0  ;;  %v64_v5 = vld [vmem:[#allocation4 + $0x8] sm:$0xff]  ;;  %56 = vst.msk [vmem:[%s222_s2] sm:$0x3] %vm55_vm0, %v179_v13 }
   0xc   :  { %v65_v6 = vmax.f32 %v63_v2, 0.0  ;;  %v66_v7 = vmax.f32 %v64_v5, 0.0  ;;  %vm94_vm1 = vcmask 1041408  }
   0xd   :  { %v61_v8 = vmin.f32 %v59_v3, 1.0  ;;  %v62_v9 = vmin.f32 %v60_v4, 1.0 }
   0xe   :  { %v67_v10 = vmin.f32 %v65_v6, 1.0  ;;  %v68_v11 = vmin.f32 %v66_v7, 1.0 }
  0x10   :  { %v69_v12 = vsub.f32 %v61_v8, %v67_v10  ;;  %v70_v14 = vsub.f32 %v62_v9, %v68_v11 }
  0x12   :  { %v71_v15 = vmul.f32 %v69_v12, %v69_v12  ;;  %v72_v16 = vmul.f32 %v70_v14, %v70_v14  ;;  %v112_v40 = vld [vmem:[%s222_s2] sm:$0x3] }
  0x14   :  { %75 = vst [vmem:[#allocation1] ss:$4 sm:$0xff] %v71_v15 }
  0x15   :  { %77 = vst [vmem:[#allocation1 + $0x20] ss:$4 sm:$0xff] %v72_v16 }
  0x1b   :  { %v78_v17 = vld.sshfl [vmem:[#allocation1] sm:$0xff pattern:$0x73625140]  ;;  %v79_v18 = vld.sshfl [vmem:[#allocation1 + $0x8] sm:$0xff pattern:$0x73625140] }
  0x1c   :  { %v80_v19 = vld.sshfl [vmem:[#allocation1 + $0x10] sm:$0xff pattern:$0x73625140]  ;;  %v81_v20 = vld.sshfl [vmem:[#allocation1 + $0x18] sm:$0xff pattern:$0x73625140] }
  0x1d   :  { %v95_v21 = vsel %vm94_vm1, %v78_v17, 0.0  ;;  %v96_v22 = vsel %vm94_vm1, %v79_v18, 0.0  ;;  %v98_v23 = vsel %vm94_vm1, %v80_v19, 0.0  ;;  %v82_v24 = vld.sshfl [vmem:[#allocation1 + $0x20] sm:$0xff pattern:$0x73625140] }
  0x1e   :  { %v97_v25 = vadd.f32 %v96_v22, %v95_v21  ;;  %v100_v26 = vsel %vm94_vm1, %v81_v20, 0.0  ;;  %v83_v27 = vld.sshfl [vmem:[#allocation1 + $0x28] sm:$0xff pattern:$0x73625140]  ;;  %v102_v29 = vsel %vm94_vm1, %v82_v24, 0.0 }
  0x1f   :  { %v84_v30 = vld.sshfl [vmem:[#allocation1 + $0x30] sm:$0xff pattern:$0x73625140]  ;;  %v104_v32 = vsel %vm94_vm1, %v83_v27, 0.0 }
  0x20   :  { %v99_v28 = vadd.f32 %v98_v23, %v97_v25  ;;  %v85_v33 = vld.sshfl [vmem:[#allocation1 + $0x38] sm:$0xff pattern:$0x73625140]  ;;  %v106_v35 = vsel %vm94_vm1, %v84_v30, 0.0 }
  0x21   :  { %v108_v37 = vsel %vm94_vm1, %v85_v33, 0.0 }
  0x22   :  { %v101_v31 = vadd.f32 %v100_v26, %v99_v28 }
  0x24   :  { %v103_v34 = vadd.f32 %v102_v29, %v101_v31 }
  0x26   :  { %v105_v36 = vadd.f32 %v104_v32, %v103_v34 }
  0x28   :  { %v107_v38 = vadd.f32 %v106_v35, %v105_v36 }
  0x2a   :  { %v109_v39 = vadd.f32 %v108_v37, %v107_v38 }
  0x2c   :  { %110 = vadd.xlane.f32.xlu0 %v109_v39 }
  0x9f   :  { %v111_v41 = vpop.xlane.xlu0 %110 }
  0xa0   :  { %v113_v42 = vadd.f32 %v112_v40, %v111_v41 }
  0xa2   :  { %115 = vst.msk [vmem:[%s222_s2] sm:$0x3] %vm55_vm0, %v113_v42 }
  0xa3   :  { %120 = vsyncpa [#allocation3], 1 }
  0xa4   :  { %121 = vsyncpa [#allocation5], 1 }

</bundles_post_ra>
